<compile_context>
chip_gen: v7x
topology: tpu7x:2x2x1
jax: 0.10.0
libtpu: 0.0.40
codegen_flags: <defaults>
</compile_context>

<pallas_src>
import jax
import jax.numpy as jnp
from jax.experimental import pallas as pl
from jax.experimental.pallas import tpu as pltpu

TEMPORAL_FILTER_SIZE = 25
CROP = 2 * TEMPORAL_FILTER_SIZE - 2  # = 48 trailing time steps removed


def _add_kernel(x_ref, r_ref, o_ref):
    # Tiled path: x / r / o blocks are identical in shape; the crop is handled
    # entirely by the output-sized grid bounds.  Straight vld/vadd/vst stream.
    o_ref[...] = x_ref[...] + r_ref[...]


def _crop_add_kernel(x_ref, r_ref, o_ref):
    # Fallback path (T_out < 128): x block carries the full T_in extent; drop
    # the trailing CROP steps with a static slice, then add the residual.
    t_out = o_ref.shape[-1]
    o_ref[...] = x_ref[:, :t_out] + r_ref[...]


def shortcut(this_input, residual):
    """this_input: (N, C, T_in), residual: (N, C, T_in - CROP)."""
    N, C, T_in = this_input.shape
    T_out = T_in - CROP
    assert T_out > 0, "time dimension must exceed 2*temporal_filter_size - 2"
    assert residual.shape == (N, C, T_out), (residual.shape, (N, C, T_out))
    assert residual.dtype == this_input.dtype

    dtype = this_input.dtype
    itemsize = jnp.dtype(dtype).itemsize

    # Flatten (N, C) -> rows: free contiguous reshape, dense sublane packing.
    R = N * C
    x2 = this_input.reshape(R, T_in)
    r2 = residual.reshape(R, T_out)

    if T_out >= 128:
        # ---- Tiled, lane-aligned path -------------------------------------
        # Time tile: multiple of 128 lanes, ~4 KiB per row regardless of dtype
        # (1024 f32 / 2048 bf16 / 4096 int8 lanes), capped by T_out.
        lane_tile = 1024 * max(1, 4 // itemsize)
        TT = min(lane_tile, (T_out // 128) * 128)
        # Row tile: cap each block at ~1 MiB so 3 arrays x 2 buffers ~ 6 MiB.
        tr_cap = max(8, ((1 << 20) // (TT * itemsize)) // 8 * 8)
        TR = R if R <= tr_cap else tr_cap

        grid = (pl.cdiv(R, TR), pl.cdiv(T_out, TT))
        idx = lambda i, t: (i, t)  # identical map for x, r and out
        in_specs = [
            pl.BlockSpec((TR, TT), idx),   # x: crop == never visiting tail blocks
            pl.BlockSpec((TR, TT), idx),   # residual
        ]
        out_spec = pl.BlockSpec((TR, TT), idx)
        kernel = _add_kernel
        dims = ("parallel", "parallel")
    else:
        # ---- Fallback for tiny time extents -------------------------------
        # Time blocks equal the full array extents (layout-legal for any T);
        # rows are tiled in multiples of 8 (or the full R when small).
        TR = R if R <= 1024 else 1024
        grid = (pl.cdiv(R, TR),)
        in_specs = [
            pl.BlockSpec((TR, T_in), lambda i: (i, 0)),
            pl.BlockSpec((TR, T_out), lambda i: (i, 0)),
        ]
        out_spec = pl.BlockSpec((TR, T_out), lambda i: (i, 0))
        kernel = _crop_add_kernel
        dims = ("parallel",)

    out2 = pl.pallas_call(
        kernel,
        out_shape=jax.ShapeDtypeStruct((R, T_out), dtype),
        grid=grid,
        in_specs=in_specs,
        out_specs=out_spec,
        # residual has the same shape/dtype as the output and each element is
        # read exactly once before its block is written back -> safe to alias.
        input_output_aliases={1: 0},
        compiler_params=pltpu.CompilerParams(dimension_semantics=dims),
    )(x2, r2)

    return out2.reshape(N, C, T_out)


if __name__ == "__main__":
    key = jax.random.PRNGKey(0)

    def _check(n, c, t_in, dtype, tag):
        t_out = t_in - CROP
        k1, k2 = jax.random.split(jax.random.fold_in(key, 131 * t_in + c))
        x = jax.random.normal(k1, (n, c, t_in), dtype=jnp.float32).astype(dtype)
        r = jax.random.normal(k2, (n, c, t_out), dtype=jnp.float32).astype(dtype)

        # Reference (mirrors the PyTorch forward exactly); computed first.
        ref = x[:, :, :t_out] + r

        out = jax.block_until_ready(shortcut(x, r))
        assert out.shape == ref.shape and out.dtype == ref.dtype, tag
        tol = 1e-6 if dtype == jnp.float32 else 1e-2
        assert jnp.allclose(out.astype(jnp.float32), ref.astype(jnp.float32),
                            atol=tol, rtol=tol), tag

    # 1) Small shapes implied by the module (batch=2, channels=4, time=64);
    #    T_out = 16 < 128 -> fallback full-time-block path.
    _check(2, 4, 64, jnp.float32, "small/fallback")

    # 2) Tiled f32 path with a partial trailing time block (masked stores):
    #    T_out = 1280, TT = 1024 -> 2 time blocks, last one partial.
    _check(2, 16, 1280 + CROP, jnp.float32, "tiled/partial")

    # 3) bf16 path (dtype-aware doubled time tile, TT = 1024 = full extent).
    _check(1, 8, 1024 + CROP, jnp.bfloat16, "tiled/bf16")

    print("KERNEL_OK")
</pallas_src>

<mosaic_0001>
module attributes {stable_mosaic.version = 11 : i64} {
  func.func @_crop_add_kernel(%arg0: i32, %arg1: memref<8x64xf32, #tpu.memory_space<vmem>>, %arg2: memref<8x16xf32, #tpu.memory_space<vmem>>, %arg3: memref<8x16xf32, #tpu.memory_space<vmem>>) attributes {dimension_semantics = [#tpu.dimension_semantics<parallel>], iteration_bounds = array<i64: 1>, scalar_prefetch = 0 : i64, scratch_operands = 0 : i64, tpu.core_type = #tpu.core_type<tc>, window_params = [{transform_indices = @transform_0, window_bounds = array<i64: 8, 64>}, {transform_indices = @transform_1, window_bounds = array<i64: 8, 16>}, {transform_indices = @transform_2, window_bounds = array<i64: 8, 16>}]} {
    %c0 = arith.constant 0 : index
    %c0_0 = arith.constant 0 : index
    %0 = vector.load %arg1[%c0, %c0_0] : memref<8x64xf32, #tpu.memory_space<vmem>>, vector<8x16xf32>
    %c0_1 = arith.constant 0 : index
    %c0_2 = arith.constant 0 : index
    %1 = vector.load %arg2[%c0_1, %c0_2] : memref<8x16xf32, #tpu.memory_space<vmem>>, vector<8x16xf32>
    %2 = arith.addf %0, %1 : vector<8x16xf32>
    %c0_3 = arith.constant 0 : index
    %c0_4 = arith.constant 0 : index
    %3 = vector.load %arg3[%c0_3, %c0_4] : memref<8x16xf32, #tpu.memory_space<vmem>>, vector<8x16xf32>
    tpu.vector_store %arg3[%c0_3, %c0_4], %2 {strides = array<i32>} : memref<8x16xf32, #tpu.memory_space<vmem>>, vector<8x16xf32>,
    return
  }
  func.func @transform_0(%arg0: i32) -> (i32, i32) {
    %c0_i32 = arith.constant 0 : i32
    %c0_i32_0 = arith.constant 0 : i32
    return %arg0, %c0_i32 : i32, i32
  }
  func.func @transform_1(%arg0: i32) -> (i32, i32) {
    %c0_i32 = arith.constant 0 : i32
    %c0_i32_0 = arith.constant 0 : i32
    return %arg0, %c0_i32 : i32, i32
  }
  func.func @transform_2(%arg0: i32) -> (i32, i32) {
    %c0_i32 = arith.constant 0 : i32
    %c0_i32_0 = arith.constant 0 : i32
    return %arg0, %c0_i32 : i32, i32
  }
}

</mosaic_0001>

<bundles_post_ra>
// kernel: tpu_custom_call.1
= control target key start
LH: loop header
LB: loop body
LE: loop exit
PB: predicated region body
PF: predicated region fallthrough
CT: control target
= control target key end

     0   :  { %7 = vsyncpa [#allocation3], 0  ;;  %s138_s0 = inlined_call_operand.vmem [shape: f32[8,64], index: 0, kind: input, shape index: {}]   ;;  %s139_s1 = inlined_call_operand.hbm [shape: f32[8,16], index: 1, kind: input, shape index: {}, may-alias: {1,2}]   ;;  %s140_s2 = inlined_call_operand.hbm [shape: f32[8,16], index: 2, kind: output, shape index: {}, may-alias: {1,2}]  }
   0x1   :  { %8 = vsyncpa [#allocation4], 0  ;;  %s94_s9 = smov [#allocation2]   ;;  %s46_s13 = scalar_lea.hbm %s139_s1, 128 }
   0x2   :  { %s17_s10 = sshll.u32 %s94_s9, 4  ;;  %p47_p0 = scmp.ne.s32.totalorder %s139_s1, %s46_s13  ;;  %s18_s10 = int_to_ptr.vmem [resolvable:$true] %s17_s10 }
   0x3   :  { %p50_p1 = scmp.lt.u32.totalorder %s46_s13, %s139_s1 }
   0x5   :  { %p52_p2 = pnand %p50_p1, %p47_p0 }
   0x7   :  { %55 = shalt.err (!%p52_p2)
}
   0x8   :  { %s56_s18 = scalar_lea.vmem %s18_s10, 128  ;;  %p61_p4 = scmp.lt.s32.totalorder %s18_s10, %s18_s10 }
   0x9   :  { %p57_p3 = scmp.ne.s32.totalorder %s18_s10, %s56_s18  ;;  %p62_p5 = scmp.lt.s32.totalorder %s56_s18, %s56_s18 }
   0xb   :  { %p63_p6 = por %p62_p5, %p61_p4 }
   0xd   :  { %p64_p7 = pnand %p63_p6, %p57_p3 }
   0xf   :  { %67 = shalt.err (!%p64_p7)
}
  0x10   :  { %20 = dma.hbm_to_vmem [thread:$0]  %s139_s1, 128, %s18_s10, [#allocation3]  }
  0x11   :  { %90 = dma.done.wait [#allocation3], 128  }
  0x12   :  { %91 = vsyncadd [#allocation3], 4294967168  ;;  %s95_s21 = smov [#allocation5]   ;;  %v24_v0 = vld [vmem:[%s138_s0] sm:$0xff]  ;;  %vm27_vm0 = vcmask 130048  }
  0x13   :  { %s35_s22 = sshll.u32 %s95_s21, 4  ;;  %v25_v1 = vld [vmem:[#allocation2] sm:$0xff]  ;;  %s36_s22 = int_to_ptr.vmem [resolvable:$true] %s35_s22 }
  0x14   :  { %v26_v2 = vadd.f32 %v25_v1, %v24_v0  ;;  %s68_s25 = scalar_lea.vmem %s36_s22, 128  ;;  %p73_p9 = scmp.lt.s32.totalorder %s36_s22, %s36_s22 }
  0x15   :  { %p69_p8 = scmp.ne.s32.totalorder %s36_s22, %s68_s25  ;;  %p74_p10 = scmp.lt.s32.totalorder %s68_s25, %s68_s25 }
  0x16   :  { %28 = vst.msk [vmem:[#allocation5] sm:$0xff] %vm27_vm0, %v26_v2 }
  0x17   :  { %p75_p11 = por %p74_p10, %p73_p9 }
  0x19   :  { %p76_p12 = pnand %p75_p11, %p69_p8 }
  0x1b   :  { %79 = shalt.err (!%p76_p12)
}
  0x1c   :  { %s80_s27 = scalar_lea.hbm %s140_s2, 128 }
  0x1d   :  { %p81_p13 = scmp.ne.s32.totalorder %s140_s2, %s80_s27  ;;  %p84_p0 = scmp.lt.u32.totalorder %s80_s27, %s140_s2 }
  0x1f   :  { %p86_p1 = pnand %p84_p0, %p81_p13 }
  0x21   :  { %89 = shalt.err (!%p86_p1)
}
  0x22   :  { %38 = dma.vmem_to_hbm [thread:$0]  %s36_s22, 128, %s140_s2, [#allocation4]  }
  0x23   :  { %92 = dma.done.wait [#allocation4], 128  }
  0x24   :  { %93 = vsyncadd [#allocation4], 4294967168 }
  0x25   :  { %42 = vsyncpa [#allocation3], 1 }
  0x26   :  { %43 = vsyncpa [#allocation4], 1 }

</bundles_post_ra>
